<compile_context>
chip_gen: v5e
topology: v5e:2x2
jax: 0.10.0
libtpu: 0.0.40
codegen_flags: <defaults>
</compile_context>

<pallas_src>
import functools

import jax
import jax.numpy as jnp
from jax.experimental import pallas as pl
from jax.experimental.pallas import tpu as pltpu


def _gaussian_rbf_kernel(x_ref, sel_ref, off_ref, coeff_ref, o_ref, *, pack):
    # x_ref:     (tm, pack)          packed distances (pack columns per row)
    # sel_ref:   (pack, pack*n_rbf)  0/1 selection matrix (lane replication)
    # off_ref:   (1, pack*n_rbf)     Gaussian centers, tiled `pack` times
    # coeff_ref: (1, pack*n_rbf)     -0.5 / widths**2, tiled `pack` times
    # o_ref:     (tm, pack*n_rbf)    lane-dense output block
    x = x_ref[...]
    if pack > 1:
        # Replicate each of the `pack` distance columns across its n_rbf-lane
        # segment: x_rep[r, p*n_rbf + j] = x[r, p].  Exact (one 1.0 per column)
        # and runs on the otherwise-idle MXU.
        x_rep = jnp.dot(x, sel_ref[...], preferred_element_type=jnp.float32)
    else:
        x_rep = x                               # (tm, 1) broadcasts over lanes
    diff = x_rep - off_ref[...]
    o_ref[...] = jnp.exp(coeff_ref[...] * (diff * diff)).astype(o_ref.dtype)


def gaussian_rbf_params(n_rbf, cutoff, start=0.0):
    """Deterministic buffers matching the PyTorch __init__."""
    offsets = jnp.linspace(start, cutoff, n_rbf, dtype=jnp.float32)
    if n_rbf > 1:
        width_val = jnp.abs(offsets[1] - offsets[0])
    else:
        width_val = jnp.float32(1.0)
    widths = width_val * jnp.ones((n_rbf,), dtype=jnp.float32)
    return offsets, widths


def _ceil_to(x, mult):
    return ((x + mult - 1) // mult) * mult


def gaussian_rbf(inputs, offsets, widths, *, tm=2048, out_dtype=jnp.float32):
    """Pallas implementation of GaussianRBF.forward.

    inputs: float array of arbitrary shape (...,)
    returns: array of shape (..., n_rbf), dtype `out_dtype` (f32 by default).
    """
    orig_shape = inputs.shape
    n_rbf = int(offsets.shape[0])

    x_flat = inputs.reshape(-1).astype(jnp.float32)
    m = int(x_flat.shape[0])
    if m == 0:
        return jnp.zeros((*orig_shape, n_rbf), out_dtype)

    # Lane packing factor: fill all 128 lanes per output row when possible.
    pack = 128 // n_rbf if (n_rbf < 128 and 128 % n_rbf == 0) else 1
    lanes = pack * n_rbf

    rows = -(-m // pack)                          # ceil(m / pack)

    # Row tile: multiple of 8, as large as requested, capped so the grid has
    # >= 2 steps when there is enough work (feeds both TensorCores on v7x).
    tm_eff = max(8, (int(tm) // 8) * 8)
    if rows > 16:
        tm_eff = min(tm_eff, max(8, _ceil_to(-(-rows // 2), 8)))
    else:
        tm_eff = min(tm_eff, _ceil_to(rows, 8))
    rows_pad = _ceil_to(rows, tm_eff)

    n_pad_elems = rows_pad * pack - m
    if n_pad_elems:
        x_flat = jnp.pad(x_flat, (0, n_pad_elems))
    x2d = x_flat.reshape(rows_pad, pack)

    # Constant rows, hoisted out of the kernel (no widths stream, no divide
    # inside the kernel).
    offsets_f32 = offsets.astype(jnp.float32)
    coeff = -0.5 / (widths.astype(jnp.float32) ** 2)
    off_row = jnp.tile(offsets_f32, pack).reshape(1, lanes)
    coeff_row = jnp.tile(coeff, pack).reshape(1, lanes)
    # 0/1 selection matrix for lane replication of the packed distances.
    sel = (jnp.arange(lanes)[None, :] // n_rbf
           == jnp.arange(pack)[:, None]).astype(jnp.float32)

    grid = (rows_pad // tm_eff,)

    out = pl.pallas_call(
        functools.partial(_gaussian_rbf_kernel, pack=pack),
        out_shape=jax.ShapeDtypeStruct((rows_pad, lanes), out_dtype),
        grid_spec=pltpu.PrefetchScalarGridSpec(
            num_scalar_prefetch=0,
            grid=grid,
            in_specs=[
                pl.BlockSpec((tm_eff, pack), lambda i: (i, 0)),
                pl.BlockSpec((pack, lanes), lambda i: (0, 0)),
                pl.BlockSpec((1, lanes), lambda i: (0, 0)),
                pl.BlockSpec((1, lanes), lambda i: (0, 0)),
            ],
            out_specs=pl.BlockSpec((tm_eff, lanes), lambda i: (i, 0)),
        ),
        compiler_params=pltpu.CompilerParams(
            dimension_semantics=("parallel",)),
    )(x2d, sel, off_row, coeff_row)

    # (rows_pad, pack*n_rbf) row-major is the same memory as
    # (rows_pad*pack, n_rbf); this reshape + slice is layout-free.
    out = out.reshape(rows_pad * pack, n_rbf)[:m]
    return out.reshape(*orig_shape, n_rbf)


def gaussian_rbf_reference(inputs, offsets, widths):
    coeff = -0.5 / jnp.power(widths, 2)
    diff = inputs[..., None] - offsets
    return jnp.exp(coeff * jnp.power(diff, 2))


if __name__ == "__main__":
    key = jax.random.PRNGKey(0)

    n_rbf = 32
    cutoff = 5.0
    start = 0.0
    offsets, widths = gaussian_rbf_params(n_rbf, cutoff, start)

    k1, k2 = jax.random.split(key)

    # Small distance tensor (batch=2, pairs=8): exercises the pack=4,
    # single-grid-step path.
    d_small = jax.random.uniform(
        k1, (2, 8), dtype=jnp.float32, minval=0.0, maxval=cutoff)
    y = jax.block_until_ready(gaussian_rbf(d_small, offsets, widths))
    y_ref = gaussian_rbf_reference(d_small, offsets, widths)
    assert y.shape == (2, 8, n_rbf), y.shape
    assert jnp.allclose(y, y_ref, atol=1e-5, rtol=1e-5), "mismatch (small)"

    # Non-multiple shape (batch=4, pairs=50): exercises padding and a
    # multi-step parallel grid.
    d_big = jax.random.uniform(
        k2, (4, 50), dtype=jnp.float32, minval=0.0, maxval=cutoff)
    y2 = jax.block_until_ready(gaussian_rbf(d_big, offsets, widths, tm=64))
    y2_ref = gaussian_rbf_reference(d_big, offsets, widths)
    assert y2.shape == (4, 50, n_rbf), y2.shape
    assert jnp.allclose(y2, y2_ref, atol=1e-5, rtol=1e-5), "mismatch (large)"

    print("KERNEL_OK")
</pallas_src>

<mosaic_0001>
module attributes {stable_mosaic.version = 11 : i64} {
  func.func @_gaussian_rbf_kernel(%arg0: i32, %arg1: memref<8x4xf32, #tpu.memory_space<vmem>>, %arg2: memref<4x128xf32, #tpu.memory_space<vmem>>, %arg3: memref<1x128xf32, #tpu.memory_space<vmem>>, %arg4: memref<1x128xf32, #tpu.memory_space<vmem>>, %arg5: memref<8x128xf32, #tpu.memory_space<vmem>>) attributes {dimension_semantics = [#tpu.dimension_semantics<parallel>], iteration_bounds = array<i64: 1>, scalar_prefetch = 0 : i64, scratch_operands = 0 : i64, tpu.core_type = #tpu.core_type<tc>, window_params = [{transform_indices = @transform_0, window_bounds = array<i64: 8, 4>}, {pipeline_mode = #tpu.pipeline_mode<synchronous>, transform_indices = @transform_1, window_bounds = array<i64: 4, 128>}, {pipeline_mode = #tpu.pipeline_mode<synchronous>, transform_indices = @transform_2, window_bounds = array<i64: 1, 128>}, {pipeline_mode = #tpu.pipeline_mode<synchronous>, transform_indices = @transform_3, window_bounds = array<i64: 1, 128>}, {transform_indices = @transform_4, window_bounds = array<i64: 8, 128>}]} {
    %c0 = arith.constant 0 : index
    %c0_0 = arith.constant 0 : index
    %0 = vector.load %arg1[%c0, %c0_0] : memref<8x4xf32, #tpu.memory_space<vmem>>, vector<8x4xf32>
    %c0_1 = arith.constant 0 : index
    %c0_2 = arith.constant 0 : index
    %1 = vector.load %arg2[%c0_1, %c0_2] : memref<4x128xf32, #tpu.memory_space<vmem>>, vector<4x128xf32>
    %cst = arith.constant dense<0.000000e+00> : vector<8x128xf32>
    %2 = tpu.matmul %0, %1, %cst {dimension_numbers = #tpu.dot_dimension_numbers<[1], [0], [0], [1], [0, 0, 1, 1], [], []>} : vector<8x4xf32>, vector<4x128xf32>, vector<8x128xf32> -> vector<8x128xf32>
    %c0_3 = arith.constant 0 : index
    %c0_4 = arith.constant 0 : index
    %3 = vector.load %arg3[%c0_3, %c0_4] : memref<1x128xf32, #tpu.memory_space<vmem>>, vector<1x128xf32>
    %4 = vector.broadcast %3 : vector<1x128xf32> to vector<8x128xf32>
    %5 = arith.subf %2, %4 : vector<8x128xf32>
    %c0_5 = arith.constant 0 : index
    %c0_6 = arith.constant 0 : index
    %6 = vector.load %arg4[%c0_5, %c0_6] : memref<1x128xf32, #tpu.memory_space<vmem>>, vector<1x128xf32>
    %7 = arith.mulf %5, %5 : vector<8x128xf32>
    %8 = vector.broadcast %6 : vector<1x128xf32> to vector<8x128xf32>
    %9 = arith.mulf %8, %7 : vector<8x128xf32>
    %10 = math.exp %9 : vector<8x128xf32>
    %c0_7 = arith.constant 0 : index
    %c0_8 = arith.constant 0 : index
    %11 = vector.load %arg5[%c0_7, %c0_8] : memref<8x128xf32, #tpu.memory_space<vmem>>, vector<8x128xf32>
    tpu.vector_store %arg5[%c0_7, %c0_8], %10 {strides = array<i32>} : memref<8x128xf32, #tpu.memory_space<vmem>>, vector<8x128xf32>,
    return
  }
  func.func @transform_0(%arg0: i32) -> (i32, i32) {
    %c0_i32 = arith.constant 0 : i32
    %c0_i32_0 = arith.constant 0 : i32
    return %arg0, %c0_i32 : i32, i32
  }
  func.func @transform_1(%arg0: i32) -> (i32, i32) {
    %c0_i32 = arith.constant 0 : i32
    %c0_i32_0 = arith.constant 0 : i32
    %c0_i32_1 = arith.constant 0 : i32
    return %c0_i32, %c0_i32_0 : i32, i32
  }
  func.func @transform_2(%arg0: i32) -> (i32, i32) {
    %c0_i32 = arith.constant 0 : i32
    %c0_i32_0 = arith.constant 0 : i32
    %c0_i32_1 = arith.constant 0 : i32
    return %c0_i32, %c0_i32_0 : i32, i32
  }
  func.func @transform_3(%arg0: i32) -> (i32, i32) {
    %c0_i32 = arith.constant 0 : i32
    %c0_i32_0 = arith.constant 0 : i32
    %c0_i32_1 = arith.constant 0 : i32
    return %c0_i32, %c0_i32_0 : i32, i32
  }
  func.func @transform_4(%arg0: i32) -> (i32, i32) {
    %c0_i32 = arith.constant 0 : i32
    %c0_i32_0 = arith.constant 0 : i32
    return %arg0, %c0_i32 : i32, i32
  }
}

</mosaic_0001>

<bundles_post_ra>
// kernel: tpu_custom_call.1
= control target key start
LH: loop header
LB: loop body
LE: loop exit
PB: predicated region body
PF: predicated region fallthrough
CT: control target
= control target key end

     0   :  { %vm24_vm0 = vcmask 1043456   ;;  %vm20_vm1 = vcmask 31744   ;;  %s152_s0 = inlined_call_operand.vmem [shape: f32[8,4], index: 0, kind: input, shape index: {}]   ;;  %s153_s1 = inlined_call_operand.vmem [shape: f32[4,128], index: 1, kind: input, shape index: {}]   ;;  %s154_s2 = inlined_call_operand.vmem [shape: f32[1,128], index: 2, kind: input, shape index: {}]   ;;  %s155_s3 = inlined_call_operand.vmem [shape: f32[1,128], index: 3, kind: input, shape index: {}]   ;;  %s156_s4 = inlined_call_operand.hbm [shape: f32[8,128], index: 4, kind: output, shape index: {}]  }
   0x1   :  { %v19_v0 = vld [vmem:[%s153_s1] sm:$0xf] }
   0x2   :  { %v18_v1 = vld [vmem:[%s152_s0] sm:$0xff]  ;;  %78 = vmatpush.msk.msra.mxu0 %vm24_vm0, %v19_v0 }
   0x3   :  { %9 = vsyncpa [#allocation3], 0  ;;  %79 = vmatmul.msk.f32.vlgmr.msra.gmra.mxu0 %vm20_vm1, %v18_v1  ;;  %v81_v2 = vld [vmem:[%s154_s2] ss:$0 sm:$0xff]  ;;  %s111_s1 = smov [#allocation2]   ;;  %s69_s25 = sshll.u32 %s156_s4, 4  ;;  %s70_s25 = int_to_ptr.hbm [resolvable:$true] %s69_s25 }
   0x4   :  { %v82_v5 = vld [vmem:[%s155_s3] ss:$0 sm:$0xff]  ;;  %s67_s0 = sshll.u32 %s111_s1, 4  ;;  %s68_s0 = int_to_ptr.vmem [resolvable:$true] %s67_s0 }
  0x80   :  { %v45_v3 = vpop.f32.mrf.mxu0 }
  0x81   :  { %v52_v4 = vsub.f32 %v45_v3, %v81_v2 }
  0x83   :  { %v54_v6 = vmul.f32 %v52_v4, %v52_v4 }
  0x85   :  { %v58_v7 = vmul.f32 %v82_v5, %v54_v6 }
  0x87   :  { %v59_v8 = vmul.f32 1.442695, %v58_v7 }
  0x89   :  { %83 = vpow2.f32 %v59_v8 }
  0x8f   :  { %v84_v9 = vpop.eup %83 }
  0x90   :  { %61 = vst [vmem:[#allocation2] sm:$0xff] %v84_v9 }
  0x91   :  { %72 = dma.vmem_to_hbm [thread:$0]  %s68_s0, 128, %s70_s25, [#allocation3]  }
  0x92   :  { %109 = dma.done.wait [#allocation3], 128  }
  0x93   :  { %110 = vsyncadd [#allocation3], 4294967168 }
  0x94   :  { %77 = vsyncpa [#allocation3], 1 }

</bundles_post_ra>
